<compile_context>
chip_gen: v6e
topology: v6e:2x2x1
jax: 0.10.0
libtpu: 0.0.40
codegen_flags: <defaults>
</compile_context>

<pallas_src>
import functools

import jax
import jax.numpy as jnp
from jax import lax
from jax.experimental import pallas as pl
from jax.experimental.pallas import tpu as pltpu

# ---- module-consistent hyperparameters ----
BATCH = 2
SEQ_LEN = 8
EMBED_SIZE = 16
LATENT_SIZE = 8
WORD_VOCAB_SIZE = 32
# (out_chan, in_chan, width) -- first layer consumes embed + latent channels
DECODER_KERNELS = [(32, EMBED_SIZE + LATENT_SIZE, 3), (32, 32, 3), (32, 32, 3)]
DECODER_DILATIONS = [1, 2, 4]
DECODER_PADDINGS = [d * (w - 1) for d, (_, _, w) in zip(DECODER_DILATIONS, DECODER_KERNELS)]

LANE = 128
VOCAB_PAD = ((WORD_VOCAB_SIZE + LANE - 1) // LANE) * LANE   # 32 -> 128 (lane-dense stores)
SUBLANE = 8


def _effective_shifts(seq_len):
    """Per layer: tuple of (tap_index j, shift s = d*j) with s < seq_len.

    Tap j corresponds to PyTorch kernel index width-1-j (causal input offset t - d*j).
    Taps with s >= seq_len only ever see the causal zero padding -> dropped.
    """
    out = []
    for (_, _, w), d in zip(DECODER_KERNELS, DECODER_DILATIONS):
        out.append(tuple((j, d * j) for j in range(w) if d * j < seq_len))
    return tuple(out)


def decoder_kernel(x_ref, z_ref, slab_ref, *rest,
                   layout, shifts_per_layer, seq_len, batch, drop_prob):
    """Whole batch at once.

    x_ref:    (B*L, E)       token embeddings
    z_ref:    (B, latent)    per-sequence latent
    slab_ref: (R, 128)       packed weights/biases (single DMA)
    out_ref:  (B*L, 128)     lane-dense padded logits
    """
    if drop_prob > 0.0:
        seed_ref, out_ref = rest
    else:
        (out_ref,) = rest

    def block(name):
        r0, nr, nc = layout[name]            # static python ints -> zero-cost slice
        return slab_ref[r0:r0 + nr, 0:nc]

    n_rows = x_ref.shape[0]
    latent = z_ref.shape[1]

    x = x_ref[...]                                        # (B*L, E)
    # broadcast each sequence's z to its L rows (sublane broadcast + aligned concat)
    zb = jnp.concatenate(
        [jnp.broadcast_to(z_ref[b:b + 1, :], (seq_len, latent)) for b in range(batch)],
        axis=0)                                           # (B*L, latent)

    if drop_prob > 0.0:
        # F.dropout(training=True) semantics: zero with prob p, scale kept by 1/(1-p).
        pltpu.prng_seed(seed_ref[0])
        thr = jnp.uint32(min(int(round(drop_prob * 4294967296.0)), 4294967295))
        scale = jnp.float32(1.0 / (1.0 - drop_prob))

        def _drop(v):
            bits = pltpu.bitcast(pltpu.prng_random_bits(v.shape), jnp.uint32)
            return jnp.where(bits >= thr, v * scale, 0.0)

        x = _drop(x)
        zb = _drop(zb)

    # position of each row within its own sequence (rows are batch-major);
    # causal masks for the distinct nonzero shifts, hoisted out of the layer loop.
    pos = lax.broadcasted_iota(jnp.int32, (n_rows, 1), 0) % seq_len
    distinct = sorted({s for taps in shifts_per_layer for _, s in taps if s > 0})
    masks = {s: pos >= s for s in distinct}

    def shifted(v, s):
        if s == 0:
            return v
        # causal shift by s rows: sublane roll (XLU) + zero the first s rows of every
        # sequence (also kills cross-batch wraparound rows).
        return jnp.where(masks[s], pltpu.roll(v, shift=s, axis=0), 0.0)

    # ---- layer 1: per-tap dots, embed / latent channel groups kept separate ----
    terms = []
    for j, s in shifts_per_layer[0]:
        terms.append(jnp.dot(shifted(x, s), block(f"w1e_{j}"),
                             preferred_element_type=jnp.float32))
        terms.append(jnp.dot(shifted(zb, s), block(f"w1z_{j}"),
                             preferred_element_type=jnp.float32))
    acc = terms[0]
    for t in terms[1:]:
        acc = acc + t
    h = jnp.maximum(acc + block("b1"), 0.0)               # bias (1, 32) broadcasts

    # ---- layers 2..3: per-tap dots accumulated into one f32 accumulator ----
    for li in (1, 2):
        terms = [jnp.dot(shifted(h, s), block(f"w{li + 1}_{j}"),
                         preferred_element_type=jnp.float32)
                 for j, s in shifts_per_layer[li]]
        acc = terms[0]
        for t in terms[1:]:
            acc = acc + t
        h = jnp.maximum(acc + block(f"b{li + 1}"), 0.0)

    # ---- fused nn.Linear (vocab padded to 128 lanes -> unmasked stores) ----
    logits = jnp.dot(h, block("wfc"), preferred_element_type=jnp.float32) + block("bfc")
    out_ref[...] = logits.astype(out_ref.dtype)


def prepare_weights(raw, seq_len):
    """Pack all raw (PyTorch-layout) params into ONE (R, 128) f32 slab.

    Each parameter block is zero-padded to 128 lanes and to a multiple of 8 rows so
    every block starts at a sublane-aligned offset; the kernel reads it via a static
    slice.  Conv kernel K: (C_out, C_in, width); tap j uses K[:, :, width-1-j].T.
    Layer-1 taps are split into embed rows (first E) and latent rows (last latent).
    FC weight/bias are transposed / reshaped and read at full 128-lane width (the
    zero lane padding implements the vocab 32 -> 128 padding).
    """
    shifts_per_layer = _effective_shifts(seq_len)
    blocks, layout = [], {}
    cur = 0

    def add(name, arr, read_cols=None):
        nonlocal cur
        arr = jnp.asarray(arr, jnp.float32)
        r, c = arr.shape
        rp = ((r + SUBLANE - 1) // SUBLANE) * SUBLANE
        padded = jnp.zeros((rp, LANE), jnp.float32).at[:r, :c].set(arr)
        blocks.append(padded)
        layout[name] = (cur, r, read_cols if read_cols is not None else c)
        cur += rp

    # layer 1 (split embed / latent channel groups per tap)
    K1, b1 = raw["kernels"][0], raw["biases"][0]
    out_c, _in_c, w = DECODER_KERNELS[0]
    for j, _s in shifts_per_layer[0]:
        tap = K1[:, :, w - 1 - j]                      # (C_out, C_in)
        add(f"w1e_{j}", tap[:, :EMBED_SIZE].T)         # (E, C_out)
        add(f"w1z_{j}", tap[:, EMBED_SIZE:].T)         # (latent, C_out)
    add("b1", b1.reshape(1, out_c))

    # layers 2..3
    for li in (1, 2):
        K, b = raw["kernels"][li], raw["biases"][li]
        out_c, _in_c, w = DECODER_KERNELS[li]
        for j, _s in shifts_per_layer[li]:
            add(f"w{li + 1}_{j}", K[:, :, w - 1 - j].T)
        add(f"b{li + 1}", b.reshape(1, out_c))

    # fused FC (read at full 128-lane width; zero lanes = vocab padding)
    add("wfc", raw["fc_w"].T, read_cols=VOCAB_PAD)
    add("bfc", raw["fc_b"].reshape(1, -1), read_cols=VOCAB_PAD)

    slab = jnp.concatenate(blocks, axis=0)             # (R, 128) f32
    return {"slab": slab, "layout": layout, "shifts": shifts_per_layer}


def decoder_forward(decoder_input, z, drop_prob, weights, key=None):
    """decoder_input: (B, L, E), z: (B, latent) -> logits (B, L, vocab)."""
    B, L, E = decoder_input.shape
    x2d = decoder_input.reshape(B * L, E).astype(jnp.float32)   # free row-major reshape
    z2d = z.astype(jnp.float32)
    slab = weights["slab"]

    kernel = functools.partial(
        decoder_kernel,
        layout=weights["layout"],
        shifts_per_layer=weights["shifts"],
        seq_len=L,
        batch=B,
        drop_prob=float(drop_prob))

    out_shape = jax.ShapeDtypeStruct((B * L, VOCAB_PAD), jnp.float32)

    if drop_prob > 0.0:
        if key is None:
            raise ValueError("drop_prob > 0 requires an explicit PRNG key")
        seed = jax.random.randint(key, (1,), 0, jnp.iinfo(jnp.int32).max, dtype=jnp.int32)
        padded = pl.pallas_call(
            kernel,
            out_shape=out_shape,
            in_specs=[pl.BlockSpec(memory_space=pltpu.MemorySpace.VMEM),
                      pl.BlockSpec(memory_space=pltpu.MemorySpace.VMEM),
                      pl.BlockSpec(memory_space=pltpu.MemorySpace.VMEM),
                      pl.BlockSpec(memory_space=pltpu.MemorySpace.SMEM)],
            out_specs=pl.BlockSpec(memory_space=pltpu.MemorySpace.VMEM),
        )(x2d, z2d, slab, seed)
    else:
        # single invocation, no grid, whole-array-in-VMEM defaults: 3 entry DMAs total
        padded = pl.pallas_call(kernel, out_shape=out_shape)(x2d, z2d, slab)

    return padded.reshape(B, L, VOCAB_PAD)[:, :, :WORD_VOCAB_SIZE]


def init_params(key):
    """Deterministic synthetic params matching the module's __init__ shapes."""
    keys = jax.random.split(key, 2 * len(DECODER_KERNELS) + 2)
    kernels, biases = [], []
    i = 0
    for (out_c, in_c, w) in DECODER_KERNELS:
        kernels.append(0.05 * jax.random.normal(keys[i], (out_c, in_c, w), jnp.float32)); i += 1
        biases.append(0.05 * jax.random.normal(keys[i], (out_c,), jnp.float32)); i += 1
    out_size = DECODER_KERNELS[-1][0]
    bound = 1.0 / (out_size ** 0.5)   # nn.Linear-style uniform init (synthetic)
    fc_w = jax.random.uniform(keys[i], (WORD_VOCAB_SIZE, out_size), jnp.float32,
                              -bound, bound); i += 1
    fc_b = jax.random.uniform(keys[i], (WORD_VOCAB_SIZE,), jnp.float32, -bound, bound)
    return {"kernels": kernels, "biases": biases, "fc_w": fc_w, "fc_b": fc_b}


def reference_forward(decoder_input, z, raw):
    """Pure-JAX reference mirroring the PyTorch forward (drop_prob = 0)."""
    B, L, _ = decoder_input.shape
    z_tiled = jnp.broadcast_to(z[:, None, :], (B, L, z.shape[-1]))
    x = jnp.concatenate([decoder_input, z_tiled], axis=-1)
    x = jnp.transpose(x, (0, 2, 1))                        # NCW
    for layer, (K, b) in enumerate(zip(raw["kernels"], raw["biases"])):
        d = DECODER_DILATIONS[layer]
        p = DECODER_PADDINGS[layer]
        y = lax.conv_general_dilated(x, K, window_strides=(1,), padding=[(p, p)],
                                     rhs_dilation=(d,),
                                     dimension_numbers=("NCH", "OIH", "NCH"),
                                     precision=lax.Precision.HIGHEST)
        y = y + b[None, :, None]
        y = y[:, :, : y.shape[2] - p]
        x = jnp.maximum(y, 0.0)
    x = jnp.transpose(x, (0, 2, 1))
    logits = jnp.dot(x, raw["fc_w"].T, precision=lax.Precision.HIGHEST) + raw["fc_b"]
    return logits


if __name__ == "__main__":
    key = jax.random.PRNGKey(0)
    k_in, k_z, k_par = jax.random.split(key, 3)
    decoder_input = jax.random.normal(k_in, (BATCH, SEQ_LEN, EMBED_SIZE), jnp.float32)
    z = jax.random.normal(k_z, (BATCH, LATENT_SIZE), jnp.float32)
    raw = init_params(k_par)
    weights = prepare_weights(raw, SEQ_LEN)

    # drop_prob = 0.0 for a deterministic check (in-kernel PRNG dropout path is
    # available for drop_prob > 0 but intentionally not exercised here)
    out = decoder_forward(decoder_input, z, 0.0, weights)
    out = jax.block_until_ready(out)

    ref = reference_forward(decoder_input, z, raw)
    assert out.shape == (BATCH, SEQ_LEN, WORD_VOCAB_SIZE)
    max_diff = jnp.max(jnp.abs(out - ref))
    assert jnp.allclose(out, ref, rtol=1e-3, atol=1e-3), f"max abs diff = {max_diff}"
    print("KERNEL_OK")
</pallas_src>

<mosaic_0001>
module attributes {stable_mosaic.version = 11 : i64} {
  func.func @decoder_kernel(%arg0: memref<16x16xf32, #tpu.memory_space<vmem>>, %arg1: memref<2x8xf32, #tpu.memory_space<vmem>>, %arg2: memref<296x128xf32, #tpu.memory_space<vmem>>, %arg3: memref<16x128xf32, #tpu.memory_space<vmem>>) attributes {dimension_semantics = [], scalar_prefetch = 0 : i64, scratch_operands = 0 : i64, tpu.core_type = #tpu.core_type<tc>} {
    %c0 = arith.constant 0 : index
    %c0_0 = arith.constant 0 : index
    %0 = vector.load %arg0[%c0, %c0_0] : memref<16x16xf32, #tpu.memory_space<vmem>>, vector<16x16xf32>
    %c0_1 = arith.constant 0 : index
    %c0_2 = arith.constant 0 : index
    %1 = vector.load %arg1[%c0_1, %c0_2] : memref<2x8xf32, #tpu.memory_space<vmem>>, vector<1x8xf32>
    %2 = vector.shape_cast %1 : vector<1x8xf32> to vector<1x8xf32>
    %3 = vector.broadcast %2 : vector<1x8xf32> to vector<8x8xf32>
    %c1 = arith.constant 1 : index
    %c0_3 = arith.constant 0 : index
    %4 = vector.load %arg1[%c1, %c0_3] : memref<2x8xf32, #tpu.memory_space<vmem>>, vector<1x8xf32>
    %5 = vector.shape_cast %4 : vector<1x8xf32> to vector<1x8xf32>
    %6 = vector.broadcast %5 : vector<1x8xf32> to vector<8x8xf32>
    %7 = tpu.concatenate %3, %6 in 0 : vector<8x8xf32>, vector<8x8xf32> -> vector<16x8xf32>
    %8 = tpu.iota {dimensions = array<i32: 0>} : vector<16x1xi32>
    %c8_i32 = arith.constant 8 : i32
    %c0_i32 = arith.constant 0 : i32
    %9 = arith.cmpi eq, %c8_i32, %c0_i32 : i32
    %c1_i32 = arith.constant 1 : i32
    %10 = arith.select %9, %c1_i32, %c8_i32 : i32
    %11 = vector.broadcast %10 : i32 to vector<16x1xi32>
    %12 = arith.remsi %8, %11 : vector<16x1xi32>
    %c0_i32_4 = arith.constant 0 : i32
    %13 = vector.broadcast %c0_i32_4 : i32 to vector<16x1xi32>
    %14 = arith.cmpi ne, %12, %13 : vector<16x1xi32>
    %c0_i32_5 = arith.constant 0 : i32
    %15 = vector.broadcast %c0_i32_5 : i32 to vector<16x1xi32>
    %16 = arith.cmpi slt, %12, %15 : vector<16x1xi32>
    %c0_i32_6 = arith.constant 0 : i32
    %17 = arith.cmpi slt, %10, %c0_i32_6 : i32
    %18 = vector.broadcast %17 : i1 to vector<16x1xi1>
    %19 = vector.broadcast %18 : vector<16x1xi1> to vector<16x1xi1>
    %20 = arith.xori %16, %19 : vector<16x1xi1>
    %21 = arith.andi %20, %14 : vector<16x1xi1>
    %22 = vector.broadcast %10 : i32 to vector<16x1xi32>
    %23 = arith.addi %12, %22 : vector<16x1xi32>
    %24 = arith.select %21, %23, %12 : vector<16x1xi1>, vector<16x1xi32>
    %c1_i32_7 = arith.constant 1 : i32
    %25 = vector.broadcast %c1_i32_7 : i32 to vector<16x1xi32>
    %26 = arith.cmpi sge, %24, %25 : vector<16x1xi32>
    %c2_i32 = arith.constant 2 : i32
    %27 = vector.broadcast %c2_i32 : i32 to vector<16x1xi32>
    %28 = arith.cmpi sge, %24, %27 : vector<16x1xi32>
    %c4_i32 = arith.constant 4 : i32
    %29 = vector.broadcast %c4_i32 : i32 to vector<16x1xi32>
    %30 = arith.cmpi sge, %24, %29 : vector<16x1xi32>
    %c0_8 = arith.constant 0 : index
    %c0_9 = arith.constant 0 : index
    %31 = vector.load %arg2[%c0_8, %c0_9] : memref<296x128xf32, #tpu.memory_space<vmem>>, vector<16x32xf32>
    %cst = arith.constant dense<0.000000e+00> : vector<16x32xf32>
    %32 = tpu.matmul %0, %31, %cst {dimension_numbers = #tpu.dot_dimension_numbers<[1], [0], [0], [1], [0, 0, 1, 1], [], []>} : vector<16x16xf32>, vector<16x32xf32>, vector<16x32xf32> -> vector<16x32xf32>
    %c16 = arith.constant 16 : index
    %c0_10 = arith.constant 0 : index
    %33 = vector.load %arg2[%c16, %c0_10] : memref<296x128xf32, #tpu.memory_space<vmem>>, vector<8x32xf32>
    %cst_11 = arith.constant dense<0.000000e+00> : vector<16x32xf32>
    %34 = tpu.matmul %7, %33, %cst_11 {dimension_numbers = #tpu.dot_dimension_numbers<[1], [0], [0], [1], [0, 0, 1, 1], [], []>} : vector<16x8xf32>, vector<8x32xf32>, vector<16x32xf32> -> vector<16x32xf32>
    %c1_i32_12 = arith.constant 1 : i32
    %35 = tpu.dynamic_rotate %0 by %c1_i32_12 dim 0 : vector<16x16xf32>, i32 -> vector<16x16xf32>
    %cst_13 = arith.constant 0.000000e+00 : f32
    %36 = vector.shape_cast %26 : vector<16x1xi1> to vector<16x1xi1>
    %37 = vector.broadcast %36 : vector<16x1xi1> to vector<16x16xi1>
    %38 = vector.broadcast %cst_13 : f32 to vector<16x16xf32>
    %39 = arith.select %37, %35, %38 : vector<16x16xi1>, vector<16x16xf32>
    %c24 = arith.constant 24 : index
    %c0_14 = arith.constant 0 : index
    %40 = vector.load %arg2[%c24, %c0_14] : memref<296x128xf32, #tpu.memory_space<vmem>>, vector<16x32xf32>
    %cst_15 = arith.constant dense<0.000000e+00> : vector<16x32xf32>
    %41 = tpu.matmul %39, %40, %cst_15 {dimension_numbers = #tpu.dot_dimension_numbers<[1], [0], [0], [1], [0, 0, 1, 1], [], []>} : vector<16x16xf32>, vector<16x32xf32>, vector<16x32xf32> -> vector<16x32xf32>
    %c1_i32_16 = arith.constant 1 : i32
    %42 = tpu.dynamic_rotate %7 by %c1_i32_16 dim 0 : vector<16x8xf32>, i32 -> vector<16x8xf32>
    %cst_17 = arith.constant 0.000000e+00 : f32
    %43 = vector.shape_cast %26 : vector<16x1xi1> to vector<16x1xi1>
    %44 = vector.broadcast %43 : vector<16x1xi1> to vector<16x8xi1>
    %45 = vector.broadcast %cst_17 : f32 to vector<16x8xf32>
    %46 = arith.select %44, %42, %45 : vector<16x8xi1>, vector<16x8xf32>
    %c40 = arith.constant 40 : index
    %c0_18 = arith.constant 0 : index
    %47 = vector.load %arg2[%c40, %c0_18] : memref<296x128xf32, #tpu.memory_space<vmem>>, vector<8x32xf32>
    %cst_19 = arith.constant dense<0.000000e+00> : vector<16x32xf32>
    %48 = tpu.matmul %46, %47, %cst_19 {dimension_numbers = #tpu.dot_dimension_numbers<[1], [0], [0], [1], [0, 0, 1, 1], [], []>} : vector<16x8xf32>, vector<8x32xf32>, vector<16x32xf32> -> vector<16x32xf32>
    %c2_i32_20 = arith.constant 2 : i32
    %49 = tpu.dynamic_rotate %0 by %c2_i32_20 dim 0 : vector<16x16xf32>, i32 -> vector<16x16xf32>
    %cst_21 = arith.constant 0.000000e+00 : f32
    %50 = vector.shape_cast %28 : vector<16x1xi1> to vector<16x1xi1>
    %51 = vector.broadcast %50 : vector<16x1xi1> to vector<16x16xi1>
    %52 = vector.broadcast %cst_21 : f32 to vector<16x16xf32>
    %53 = arith.select %51, %49, %52 : vector<16x16xi1>, vector<16x16xf32>
    %c48 = arith.constant 48 : index
    %c0_22 = arith.constant 0 : index
    %54 = vector.load %arg2[%c48, %c0_22] : memref<296x128xf32, #tpu.memory_space<vmem>>, vector<16x32xf32>
    %cst_23 = arith.constant dense<0.000000e+00> : vector<16x32xf32>
    %55 = tpu.matmul %53, %54, %cst_23 {dimension_numbers = #tpu.dot_dimension_numbers<[1], [0], [0], [1], [0, 0, 1, 1], [], []>} : vector<16x16xf32>, vector<16x32xf32>, vector<16x32xf32> -> vector<16x32xf32>
    %c2_i32_24 = arith.constant 2 : i32
    %56 = tpu.dynamic_rotate %7 by %c2_i32_24 dim 0 : vector<16x8xf32>, i32 -> vector<16x8xf32>
    %cst_25 = arith.constant 0.000000e+00 : f32
    %57 = vector.shape_cast %28 : vector<16x1xi1> to vector<16x1xi1>
    %58 = vector.broadcast %57 : vector<16x1xi1> to vector<16x8xi1>
    %59 = vector.broadcast %cst_25 : f32 to vector<16x8xf32>
    %60 = arith.select %58, %56, %59 : vector<16x8xi1>, vector<16x8xf32>
    %c64 = arith.constant 64 : index
    %c0_26 = arith.constant 0 : index
    %61 = vector.load %arg2[%c64, %c0_26] : memref<296x128xf32, #tpu.memory_space<vmem>>, vector<8x32xf32>
    %cst_27 = arith.constant dense<0.000000e+00> : vector<16x32xf32>
    %62 = tpu.matmul %60, %61, %cst_27 {dimension_numbers = #tpu.dot_dimension_numbers<[1], [0], [0], [1], [0, 0, 1, 1], [], []>} : vector<16x8xf32>, vector<8x32xf32>, vector<16x32xf32> -> vector<16x32xf32>
    %63 = arith.addf %32, %34 : vector<16x32xf32>
    %64 = arith.addf %63, %41 : vector<16x32xf32>
    %65 = arith.addf %64, %48 : vector<16x32xf32>
    %66 = arith.addf %65, %55 : vector<16x32xf32>
    %67 = arith.addf %66, %62 : vector<16x32xf32>
    %c72 = arith.constant 72 : index
    %c0_28 = arith.constant 0 : index
    %68 = vector.load %arg2[%c72, %c0_28] : memref<296x128xf32, #tpu.memory_space<vmem>>, vector<1x32xf32>
    %69 = vector.broadcast %68 : vector<1x32xf32> to vector<16x32xf32>
    %70 = arith.addf %67, %69 : vector<16x32xf32>
    %cst_29 = arith.constant 0.000000e+00 : f32
    %71 = vector.broadcast %cst_29 : f32 to vector<16x32xf32>
    %72 = arith.maximumf %70, %71 : vector<16x32xf32>
    %c80 = arith.constant 80 : index
    %c0_30 = arith.constant 0 : index
    %73 = vector.load %arg2[%c80, %c0_30] : memref<296x128xf32, #tpu.memory_space<vmem>>, vector<32x32xf32>
    %cst_31 = arith.constant dense<0.000000e+00> : vector<16x32xf32>
    %74 = tpu.matmul %72, %73, %cst_31 {dimension_numbers = #tpu.dot_dimension_numbers<[1], [0], [0], [1], [0, 0, 1, 1], [], []>} : vector<16x32xf32>, vector<32x32xf32>, vector<16x32xf32> -> vector<16x32xf32>
    %c2_i32_32 = arith.constant 2 : i32
    %75 = tpu.dynamic_rotate %72 by %c2_i32_32 dim 0 : vector<16x32xf32>, i32 -> vector<16x32xf32>
    %cst_33 = arith.constant 0.000000e+00 : f32
    %76 = vector.shape_cast %28 : vector<16x1xi1> to vector<16x1xi1>
    %77 = vector.broadcast %76 : vector<16x1xi1> to vector<16x32xi1>
    %78 = vector.broadcast %cst_33 : f32 to vector<16x32xf32>
    %79 = arith.select %77, %75, %78 : vector<16x32xi1>, vector<16x32xf32>
    %c112 = arith.constant 112 : index
    %c0_34 = arith.constant 0 : index
    %80 = vector.load %arg2[%c112, %c0_34] : memref<296x128xf32, #tpu.memory_space<vmem>>, vector<32x32xf32>
    %cst_35 = arith.constant dense<0.000000e+00> : vector<16x32xf32>
    %81 = tpu.matmul %79, %80, %cst_35 {dimension_numbers = #tpu.dot_dimension_numbers<[1], [0], [0], [1], [0, 0, 1, 1], [], []>} : vector<16x32xf32>, vector<32x32xf32>, vector<16x32xf32> -> vector<16x32xf32>
    %c4_i32_36 = arith.constant 4 : i32
    %82 = tpu.dynamic_rotate %72 by %c4_i32_36 dim 0 : vector<16x32xf32>, i32 -> vector<16x32xf32>
    %cst_37 = arith.constant 0.000000e+00 : f32
    %83 = vector.shape_cast %30 : vector<16x1xi1> to vector<16x1xi1>
    %84 = vector.broadcast %83 : vector<16x1xi1> to vector<16x32xi1>
    %85 = vector.broadcast %cst_37 : f32 to vector<16x32xf32>
    %86 = arith.select %84, %82, %85 : vector<16x32xi1>, vector<16x32xf32>
    %c144 = arith.constant 144 : index
    %c0_38 = arith.constant 0 : index
    %87 = vector.load %arg2[%c144, %c0_38] : memref<296x128xf32, #tpu.memory_space<vmem>>, vector<32x32xf32>
    %cst_39 = arith.constant dense<0.000000e+00> : vector<16x32xf32>
    %88 = tpu.matmul %86, %87, %cst_39 {dimension_numbers = #tpu.dot_dimension_numbers<[1], [0], [0], [1], [0, 0, 1, 1], [], []>} : vector<16x32xf32>, vector<32x32xf32>, vector<16x32xf32> -> vector<16x32xf32>
    %89 = arith.addf %74, %81 : vector<16x32xf32>
    %90 = arith.addf %89, %88 : vector<16x32xf32>
    %c176 = arith.constant 176 : index
    %c0_40 = arith.constant 0 : index
    %91 = vector.load %arg2[%c176, %c0_40] : memref<296x128xf32, #tpu.memory_space<vmem>>, vector<1x32xf32>
    %92 = vector.broadcast %91 : vector<1x32xf32> to vector<16x32xf32>
    %93 = arith.addf %90, %92 : vector<16x32xf32>
    %cst_41 = arith.constant 0.000000e+00 : f32
    %94 = vector.broadcast %cst_41 : f32 to vector<16x32xf32>
    %95 = arith.maximumf %93, %94 : vector<16x32xf32>
    %c184 = arith.constant 184 : index
    %c0_42 = arith.constant 0 : index
    %96 = vector.load %arg2[%c184, %c0_42] : memref<296x128xf32, #tpu.memory_space<vmem>>, vector<32x32xf32>
    %cst_43 = arith.constant dense<0.000000e+00> : vector<16x32xf32>
    %97 = tpu.matmul %95, %96, %cst_43 {dimension_numbers = #tpu.dot_dimension_numbers<[1], [0], [0], [1], [0, 0, 1, 1], [], []>} : vector<16x32xf32>, vector<32x32xf32>, vector<16x32xf32> -> vector<16x32xf32>
    %c4_i32_44 = arith.constant 4 : i32
    %98 = tpu.dynamic_rotate %95 by %c4_i32_44 dim 0 : vector<16x32xf32>, i32 -> vector<16x32xf32>
    %cst_45 = arith.constant 0.000000e+00 : f32
    %99 = vector.shape_cast %30 : vector<16x1xi1> to vector<16x1xi1>
    %100 = vector.broadcast %99 : vector<16x1xi1> to vector<16x32xi1>
    %101 = vector.broadcast %cst_45 : f32 to vector<16x32xf32>
    %102 = arith.select %100, %98, %101 : vector<16x32xi1>, vector<16x32xf32>
    %c216 = arith.constant 216 : index
    %c0_46 = arith.constant 0 : index
    %103 = vector.load %arg2[%c216, %c0_46] : memref<296x128xf32, #tpu.memory_space<vmem>>, vector<32x32xf32>
    %cst_47 = arith.constant dense<0.000000e+00> : vector<16x32xf32>
    %104 = tpu.matmul %102, %103, %cst_47 {dimension_numbers = #tpu.dot_dimension_numbers<[1], [0], [0], [1], [0, 0, 1, 1], [], []>} : vector<16x32xf32>, vector<32x32xf32>, vector<16x32xf32> -> vector<16x32xf32>
    %105 = arith.addf %97, %104 : vector<16x32xf32>
    %c248 = arith.constant 248 : index
    %c0_48 = arith.constant 0 : index
    %106 = vector.load %arg2[%c248, %c0_48] : memref<296x128xf32, #tpu.memory_space<vmem>>, vector<1x32xf32>
    %107 = vector.broadcast %106 : vector<1x32xf32> to vector<16x32xf32>
    %108 = arith.addf %105, %107 : vector<16x32xf32>
    %cst_49 = arith.constant 0.000000e+00 : f32
    %109 = vector.broadcast %cst_49 : f32 to vector<16x32xf32>
    %110 = arith.maximumf %108, %109 : vector<16x32xf32>
    %c256 = arith.constant 256 : index
    %c0_50 = arith.constant 0 : index
    %111 = vector.load %arg2[%c256, %c0_50] : memref<296x128xf32, #tpu.memory_space<vmem>>, vector<32x128xf32>
    %cst_51 = arith.constant dense<0.000000e+00> : vector<16x128xf32>
    %112 = tpu.matmul %110, %111, %cst_51 {dimension_numbers = #tpu.dot_dimension_numbers<[1], [0], [0], [1], [0, 0, 1, 1], [], []>} : vector<16x32xf32>, vector<32x128xf32>, vector<16x128xf32> -> vector<16x128xf32>
    %c288 = arith.constant 288 : index
    %c0_52 = arith.constant 0 : index
    %113 = vector.load %arg2[%c288, %c0_52] : memref<296x128xf32, #tpu.memory_space<vmem>>, vector<1x128xf32>
    %114 = vector.broadcast %113 : vector<1x128xf32> to vector<16x128xf32>
    %115 = arith.addf %112, %114 : vector<16x128xf32>
    %c0_53 = arith.constant 0 : index
    %c0_54 = arith.constant 0 : index
    %116 = vector.load %arg3[%c0_53, %c0_54] : memref<16x128xf32, #tpu.memory_space<vmem>>, vector<16x128xf32>
    tpu.vector_store %arg3[%c0_53, %c0_54], %115 {strides = array<i32>} : memref<16x128xf32, #tpu.memory_space<vmem>>, vector<16x128xf32>,
    return
  }
}

</mosaic_0001>

<bundles_post_ra>
// kernel: tpu_custom_call.1
= control target key start
LH: loop header
LB: loop body
LE: loop exit
PB: predicated region body
PF: predicated region fallthrough
CT: control target
= control target key end

     0   :  { %8 = vsyncpa [#allocation3], 0  ;;  %s1656_s0 = inlined_call_operand.hbm [shape: f32[16,16], index: 0, kind: input, shape index: {}]   ;;  %s1657_s1 = inlined_call_operand.hbm [shape: f32[2,8], index: 1, kind: input, shape index: {}]   ;;  %s1658_s2 = inlined_call_operand.hbm [shape: f32[296,128], index: 2, kind: input, shape index: {}]   ;;  %s1659_s3 = inlined_call_operand.hbm [shape: f32[16,128], index: 3, kind: output, shape index: {}]  }
   0x1   :  { %9 = vsyncpa [#allocation6], 0 }
   0x2   :  { %10 = vsyncpa [#allocation4], 0  ;;  %s1507_s12 = smov [#allocation5]   ;;  %s1508_s14 = smov [#allocation2]  }
   0x3   :  { %s29_s13 = sshll.u32 %s1507_s12, 4  ;;  %s16_s15 = sshll.u32 %s1508_s14, 4  ;;  %s30_s13 = int_to_ptr.vmem [resolvable:$true] %s29_s13  ;;  %s17_s15 = int_to_ptr.vmem [resolvable:$true] %s16_s15 }
   0x4   :  { %s1429_s16 = scalar_lea.vmem %s30_s13, 32  ;;  %p1434_p1 = scmp.lt.s32.totalorder %s30_s13, %s30_s13 }
   0x5   :  { %p1430_p0 = scmp.ne.s32.totalorder %s30_s13, %s1429_s16  ;;  %p1435_p2 = scmp.lt.s32.totalorder %s1429_s16, %s1429_s16 }
   0x7   :  { %p1436_p3 = por %p1435_p2, %p1434_p1 }
   0x9   :  { %p1437_p4 = pnand %p1436_p3, %p1430_p0 }
   0xb   :  { %1440 = shalt.err (!%p1437_p4)
}
   0xc   :  { %32 = dma.hbm_to_vmem [thread:$0]  %s1657_s1, 32, %s30_s13, [#allocation6]  }
   0xd   :  { %s1449_s19 = scalar_lea.vmem %s17_s15, 256  ;;  %p1454_p6 = scmp.lt.s32.totalorder %s17_s15, %s17_s15 }
   0xe   :  { %p1450_p5 = scmp.ne.s32.totalorder %s17_s15, %s1449_s19  ;;  %p1455_p7 = scmp.lt.s32.totalorder %s1449_s19, %s1449_s19 }
  0x10   :  { %p1456_p8 = por %p1455_p7, %p1454_p6 }
  0x12   :  { %p1457_p9 = pnand %p1456_p8, %p1450_p5 }
  0x14   :  { %1460 = shalt.err (!%p1457_p9)
}
  0x15   :  { %s1509_s20 = smov 128   ;;  %s1510_s21 = smov 8  }
  0x16   :  { %22 = dma.hbm_to_vmem [thread:$0]  %s1656_s0, 256, %s17_s15, [#allocation3], %s1509_s20, %s1509_s20, %s1510_s21  }
  0x17   :  { %s1511_s24 = smov [#allocation7]  }
  0x18   :  { %s38_s25 = sshll.u32 %s1511_s24, 4  ;;  %s39_s25 = int_to_ptr.vmem [resolvable:$true] %s38_s25 }
  0x19   :  { %s1469_s1 = scalar_lea.vmem %s39_s25, 4736  ;;  %p1474_p11 = scmp.lt.s32.totalorder %s39_s25, %s39_s25 }
  0x1a   :  { %p1470_p10 = scmp.ne.s32.totalorder %s39_s25, %s1469_s1  ;;  %p1475_p12 = scmp.lt.s32.totalorder %s1469_s1, %s1469_s1 }
  0x1c   :  { %p1476_p13 = por %p1475_p12, %p1474_p11 }
  0x1e   :  { %p1477_p0 = pnand %p1476_p13, %p1470_p10 }
  0x20   :  { %1480 = shalt.err (!%p1477_p0)
}
  0x21   :  { %44 = dma.hbm_to_vmem [thread:$0]  %s1658_s2, 4736, %s39_s25, [#allocation6], %s1509_s20, %s1509_s20, %s1510_s21  }
  0x22   :  { %1501 = dma.done.wait [#allocation3], 256  }
  0x23   :  { %1502 = vsyncadd [#allocation3], 4294967040 }
  0x24   :  { %1503 = dma.done.wait [#allocation6], 4768  }
  0x25   :  { %1504 = vsyncadd [#allocation6], 4294962528  ;;  %v66_v0 = vlaneseq  ;;  %v196_v5 = vld [vmem:[#allocation7 + $0x20] sm:$0xff]  ;;  %v195_v6 = vld [vmem:[#allocation7 + $0x18] sm:$0xff]  ;;  %vm197_vm5 = vcmask 130048   ;;  %vm102_vm6 = vcmask 64512  }
  0x26   :  { %v54_v7 = vld [vmem:[#allocation2] sm:$0xff]  ;;  %1318 = vmatprep.subr.mxu1 %v196_v5  ;;  %v1557_v8 = vld [vmem:[#allocation2 + $0x8] sm:$0xff]  ;;  %v1226_v15 = vld [vmem:[#allocation5] ss:$0 sm:$0xff]  ;;  %vm661_vm11 = vcmask 261120   ;;  %s1512_s0 = smov [#allocation8]  }
  0x27   :  { %v1548_v1 = vshrl.u32 %v66_v0, 7  ;;  %v184_v9 = vrot.slane %v54_v7, 7  ;;  %v367_v10 = vrot.slane %v54_v7, 6  ;;  %1319 = vmatpush3.msra.mxu1 %v196_v5  ;;  %v185_v11 = vrot.slane %v1557_v8, 7  ;;  %v379_v12 = vld [vmem:[#allocation7 + $0x38] sm:$0xff]  ;;  %v101_v14 = vld [vmem:[#allocation7 + $0x10] sm:$0xff]  ;;  %1315 = vmatprep.mubr.msk.f32.mxu0 %vm102_vm6, %v1226_v15 }
  0x28   :  { %v368_v13 = vrot.slane %v1557_v8, 6  ;;  %1320 = vmatprep.subr.mxu1 %v195_v6  ;;  %1313 = vmatprep.subr.mxu0 %v101_v14  ;;  %v1227_v16 = vld [vmem:[#allocation5 + $0x1] ss:$0 sm:$0xff]  ;;  %v378_v24 = vld [vmem:[#allocation7 + $0x30] sm:$0xff]  ;;  %v279_v25 = vrot.slane %v1226_v15, 7  ;;  %v461_v26 = vrot.slane %v1226_v15, 6 }
  0x29   :  { %v1551_v2 = vand.u32 7, %v1548_v1  ;;  %v68_v3 = vadd.s32 8, %v1548_v1  ;;  %vm186_vm0 = vcmp.lt.s32.totalorder %v1548_v1, 1  ;;  %vm369_vm2 = vcmp.lt.s32.totalorder %v1548_v1, 2  ;;  %1321 = vmatpush3.msra.mxu1 %v195_v6  ;;  %1314 = vmatpush3.msra.mxu0 %v101_v14  ;;  %v285_v29 = vld [vmem:[#allocation7 + $0x28] sm:$0xff]  ;;  %v99_v34 = vld [vmem:[#allocation7] sm:$0xff] }
  0x2a   :  { %v188_v17 = vsel %vm186_vm0, %v185_v11, %v184_v9  ;;  %v187_v18 = vsel %vm186_vm0, %v184_v9, %v185_v11  ;;  %v371_v19 = vsel %vm369_vm2, %v368_v13, %v367_v10  ;;  %1330 = vmatprep.subr.mxu1 %v379_v12  ;;  %v370_v23 = vsel %vm369_vm2, %v367_v10, %v368_v13  ;;  %v100_v30 = vld [vmem:[#allocation7 + $0x8] sm:$0xff]  ;;  %v467_v38 = vld [vmem:[#allocation7 + $0x40] sm:$0xff]  ;;  %v658_v46 = vld [vmem:[#allocation7 + $0x78] sm:$0xff]  ;;  %s1213_s2 = sshll.u32 %s1512_s0, 4  ;;  %s1214_s2 = int_to_ptr.vmem [resolvable:$true] %s1213_s2 }
  0x2b   :  { %v1554_v4 = vand.u32 7, %v68_v3  ;;  %vm93_vm1 = vcmp.ge.s32.totalorder %v1551_v2, 1  ;;  %vm95_vm4 = vcmp.ge.s32.totalorder %v1551_v2, 2  ;;  %v280_v27 = vrot.slane %v1227_v16, 7  ;;  %1316 = vmatmul.mubr.msk.f32.vlgmr.msra.gmra.mxu0 %vm102_vm6, %v1227_v16  ;;  %1325 = vmatprep.subr.mxu0 %v285_v29  ;;  %v660_v42 = vld [vmem:[#allocation7 + $0x88] sm:$0xff]  ;;  %v659_v44 = vld [vmem:[#allocation7 + $0x80] sm:$0xff]  ;;  %p1486_p2 = scmp.lt.s32.totalorder %s1214_s2, %s1214_s2 }
  0x2c   :  { %v193_v20 = vsel %vm93_vm1, %v188_v17, 0.0  ;;  %v376_v22 = vsel %vm95_vm4, %v371_v19, 0.0  ;;  %v462_v28 = vrot.slane %v1227_v16, 6  ;;  %1326 = vmatpush3.msra.mxu0 %v285_v29  ;;  %v757_v43 = vld [vmem:[#allocation7 + $0xa8] sm:$0xff]  ;;  %v756_v45 = vld [vmem:[#allocation7 + $0xa0] sm:$0xff]  ;;  %v755_v47 = vld [vmem:[#allocation7 + $0x98] sm:$0xff] }
  0x2d   :  { %vm94_vm3 = vcmp.ge.s32.totalorder %v1554_v4, 1  ;;  %vm96_vm7 = vcmp.ge.s32.totalorder %v1554_v4, 2  ;;  %1322 = vmatprep.mubr.msk.f32.mxu1 %vm197_vm5, %v193_v20  ;;  %v282_v32 = vsel %vm186_vm0, %v280_v27, %v279_v25  ;;  %v281_v33 = vsel %vm186_vm0, %v279_v25, %v280_v27  ;;  %1337 = vmatprep.subr.mxu0 %v467_v38  ;;  %v657_v48 = vld [vmem:[#allocation7 + $0x70] sm:$0xff]  ;;  %v650_v50 = vld [vmem:[#allocation7 + $0x68] sm:$0xff]  ;;  %v649_v29 = vld [vmem:[#allocation7 + $0x60] sm:$0xff]  ;;  %s1481_s28 = scalar_lea.vmem %s1214_s2, 256 }
  0x2e   :  { %v194_v21 = vsel %vm94_vm3, %v187_v18, 0.0  ;;  %v377_v31 = vsel %vm96_vm7, %v370_v23, 0.0  ;;  %v283_v35 = vsel %vm93_vm1, %v282_v32, 0.0  ;;  %v464_v36 = vsel %vm369_vm2, %v462_v28, %v461_v26  ;;  %v754_v49 = vld [vmem:[#allocation7 + $0x90] sm:$0xff]  ;;  %p1482_p1 = scmp.ne.s32.totalorder %s1214_s2, %s1481_s28  ;;  %p1487_p3 = scmp.lt.s32.totalorder %s1481_s28, %s1481_s28 }
  0x2f   :  { %1323 = vmatmul.mubr.msk.f32.vlgmr.msra.gmra.mxu1 %vm197_vm5, %v194_v21  ;;  %v284_v37 = vsel %vm94_vm3, %v281_v33, 0.0  ;;  %v463_v39 = vsel %vm369_vm2, %v461_v26, %v462_v28  ;;  %1327 = vmatprep.mubr.msk.f32.mxu0 %vm102_vm6, %v283_v35  ;;  %v465_v40 = vsel %vm95_vm4, %v464_v36, 0.0  ;;  %vm97_vm8 = vcmp.ge.s32.totalorder %v1551_v2, 4  ;;  %v934_v32 = vld [vmem:[#allocation7 + $0xd0] sm:$0xff]  ;;  %v933_v33 = vld [vmem:[#allocation7 + $0xc8] sm:$0xff]  ;;  %v932_v35 = vld [vmem:[#allocation7 + $0xc0] sm:$0xff] }
  0x30   :  { %1331 = vmatpush3.msra.mxu1 %v379_v12  ;;  %1334 = vmatprep.mubr.msk.f32.mxu1 %vm197_vm5, %v376_v22  ;;  %v466_v41 = vsel %vm96_vm7, %v463_v39, 0.0  ;;  %vm745_vm9 = vcmp.lt.s32.totalorder %v1548_v1, 4  ;;  %vm98_vm10 = vcmp.ge.s32.totalorder %v1554_v4, 4  ;;  %v943_v36 = vld [vmem:[#allocation7 + $0xe8] sm:$0xff]  ;;  %v941_v39 = vld [vmem:[#allocation7 + $0xd8] sm:$0xff]  ;;  %v1116_v1 = vld [vmem:[#allocation7 + $0x100] sm:$0xff]  ;;  %p1488_p4 = por %p1487_p3, %p1486_p2 }
  0x31   :  { %1332 = vmatprep.subr.mxu1 %v378_v24  ;;  %1328 = vmatmul.mubr.msk.f32.vlgmr.msra.gmra.mxu0 %vm102_vm6, %v284_v37  ;;  %v931_v37 = vld [vmem:[#allocation7 + $0xb8] sm:$0xff] }
  0x32   :  { %1333 = vmatpush3.msra.mxu1 %v378_v24  ;;  %1338 = vmatpush3.msra.mxu0 %v467_v38  ;;  %v942_v38 = vld [vmem:[#allocation7 + $0xe0] sm:$0xff]  ;;  %p1489_p5 = pnand %p1488_p4, %p1482_p1 }
  0x33   :  { %1342 = vmatprep.subr.mxu1 %v100_v30  ;;  %1335 = vmatmul.mubr.msk.f32.vlgmr.msra.gmra.mxu1 %vm197_vm5, %v377_v31  ;;  %v647_v31 = vld [vmem:[#allocation7 + $0x50] sm:$0xff] }
  0x34   :  { %1343 = vmatpush3.msra.mxu1 %v100_v30  ;;  %1346 = vmatprep.mubr.msk.f32.mxu1 %vm197_vm5, %v54_v7  ;;  %v648_v30 = vld [vmem:[#allocation7 + $0x58] sm:$0xff] }
  0x35   :  { %1344 = vmatprep.subr.mxu1 %v99_v34  ;;  %1339 = vmatprep.mubr.msk.f32.mxu0 %vm102_vm6, %v465_v40 }
  0x36   :  { %1345 = vmatpush3.msra.mxu1 %v99_v34  ;;  %1340 = vmatmul.mubr.msk.f32.vlgmr.msra.gmra.mxu0 %vm102_vm6, %v466_v41  ;;  %v944_v34 = vld [vmem:[#allocation7 + $0xf0] sm:$0xff] }
  0x37   :  { %1347 = vmatmul.mubr.msk.f32.vlgmr.msra.gmra.mxu1 %vm197_vm5, %v1557_v8  ;;  %1349 = vmatprep.subr.mxu0 %v660_v42  ;;  %v1240_v8 = vld [vmem:[#allocation7 + $0x48] ss:$0 sm:$0xff] }
  0x38   :  { %1350 = vmatpush3.msra.mxu0 %v660_v42  ;;  %1360 = vmatprep.subr.mxu1 %v757_v43 }
  0x39   :  { %1351 = vmatprep.subr.mxu0 %v659_v44  ;;  %1361 = vmatpush3.msra.mxu1 %v757_v43 }
  0x3a   :  { %1352 = vmatpush3.msra.mxu0 %v659_v44  ;;  %1362 = vmatprep.subr.mxu1 %v756_v45 }
  0x3b   :  { %1353 = vmatprep.subr.mxu0 %v658_v46  ;;  %1363 = vmatpush3.msra.mxu1 %v756_v45  ;;  %v1247_v45 = vld [vmem:[#allocation7 + $0xb0] ss:$0 sm:$0xff] }
  0x3c   :  { %1354 = vmatpush3.msra.mxu0 %v658_v46  ;;  %1364 = vmatprep.subr.mxu1 %v755_v47 }
  0x3d   :  { %1355 = vmatprep.subr.mxu0 %v657_v48  ;;  %1365 = vmatpush3.msra.mxu1 %v755_v47 }
  0x3e   :  { %1356 = vmatpush3.msra.mxu0 %v657_v48  ;;  %1366 = vmatprep.subr.mxu1 %v754_v49 }
  0x3f   :  { %1367 = vmatpush3.msra.mxu1 %v754_v49  ;;  %1371 = vmatprep.subr.mxu0 %v650_v50 }
  0x40   :  { %1382 = vmatprep.subr.mxu1 %v944_v34 }
  0xeb   :  { %v1317_v52 = vpop.f32.mrf.mxu0 }
  0xed   :  { %v175_v54 = vpop.f32.mrf.mxu0 }
  0xef   :  { %v1324_v51 = vpop.f32.mrf.mxu1 }
  0xf1   :  { %v270_v53 = vpop.f32.mrf.mxu1  ;;  %v1329_v57 = vpop.f32.mrf.mxu0 }
  0xf3   :  { %v1336_v55 = vpop.f32.mrf.mxu1  ;;  %v358_v61 = vpop.f32.mrf.mxu0 }
  0xf5   :  { %v452_v56 = vpop.f32.mrf.mxu1 }
  0xf6   :  { %v1341_v5 = vpop.f32.mrf.mxu0 }
  0xf7   :  { %v1348_v58 = vpop.f32.mrf.mxu1 }
  0xf8   :  { %v627_v59 = vadd.f32 %v1348_v58, %v1317_v52  ;;  %v540_v11 = vpop.f32.mrf.mxu0 }
  0xf9   :  { %v621_v60 = vpop.f32.mrf.mxu1 }
  0xfa   :  { %v631_v62 = vadd.f32 %v1324_v51, %v627_v59  ;;  %v622_v63 = vadd.f32 %v621_v60, %v175_v54 }
  0xfc   :  { %v633_v0 = vadd.f32 %v1329_v57, %v631_v62  ;;  %v630_v3 = vadd.f32 %v622_v63, %v270_v53  ;;  %v1118_v62 = vld [vmem:[#allocation7 + $0x110] sm:$0xff]  ;;  %v1117_v63 = vld [vmem:[#allocation7 + $0x108] sm:$0xff] }
  0xfe   :  { %v632_v6 = vadd.f32 %v630_v3, %v358_v61  ;;  %v635_v7 = vadd.f32 %v1336_v55, %v633_v0  ;;  %v1119_v61 = vld [vmem:[#allocation7 + $0x118] sm:$0xff] }
  0xff   :  { %v1252_v3 = vld [vmem:[#allocation7 + $0xf8] ss:$0 sm:$0xff] }
 0x100   :  { %v637_v9 = vadd.f32 %v1341_v5, %v635_v7  ;;  %v634_v10 = vadd.f32 %v632_v6, %v452_v56 }
 0x102   :  { %v644_v12 = vadd.f32 %v1240_v8, %v637_v9  ;;  %v636_v13 = vadd.f32 %v634_v10, %v540_v11 }
 0x104   :  { %v646_v14 = vmax.f32 %v644_v12, 0.0  ;;  %v643_v15 = vadd.f32 %v1240_v8, %v636_v13  ;;  %v1253_v12 = vld [vmem:[#allocation7 + $0x120] ss:$0 sm:$0xff] }
 0x106   :  { %v645_v16 = vmax.f32 %v643_v15, 0.0  ;;  %v652_v17 = vrot.slane %v646_v14, 6  ;;  %v744_v18 = vrot.slane %v646_v14, 4 }
 0x108   :  { %v651_v19 = vrot.slane %v645_v16, 6  ;;  %v743_v20 = vrot.slane %v645_v16, 4 }
 0x10a   :  { %v654_v21 = vsel %vm369_vm2, %v652_v17, %v651_v19  ;;  %v747_v22 = vsel %vm745_vm9, %v744_v18, %v743_v20  ;;  %v653_v23 = vsel %vm369_vm2, %v651_v19, %v652_v17  ;;  %v746_v24 = vsel %vm745_vm9, %v743_v20, %v744_v18 }
 0x10b   :  { %v655_v25 = vsel %vm95_vm4, %v654_v21, 0.0  ;;  %v752_v26 = vsel %vm97_vm8, %v747_v22, 0.0  ;;  %v656_v27 = vsel %vm96_vm7, %v653_v23, 0.0  ;;  %v753_v28 = vsel %vm98_vm10, %v746_v24, 0.0 }
 0x10c   :  { %1357 = vmatprep.mubr.msk.f32.mxu0 %vm661_vm11, %v655_v25  ;;  %1368 = vmatprep.mubr.msk.f32.mxu1 %vm661_vm11, %v752_v26 }
 0x10d   :  { %1358 = vmatmul.mubr.msk.f32.vlgmr.msra.gmra.mxu0 %vm661_vm11, %v656_v27  ;;  %1369 = vmatmul.mubr.msk.f32.vlgmr.msra.gmra.mxu1 %vm661_vm11, %v753_v28 }
 0x10e   :  { %1372 = vmatpush3.msra.mxu0 %v650_v50  ;;  %1379 = vmatprep.mubr.msk.f32.mxu0 %vm661_vm11, %v645_v16 }
 0x10f   :  { %1373 = vmatprep.subr.mxu0 %v649_v29  ;;  %1383 = vmatpush3.msra.mxu1 %v944_v34 }
 0x110   :  { %1374 = vmatpush3.msra.mxu0 %v649_v29  ;;  %1384 = vmatprep.subr.mxu1 %v943_v36 }
 0x111   :  { %1375 = vmatprep.subr.mxu0 %v648_v30  ;;  %1385 = vmatpush3.msra.mxu1 %v943_v36 }
 0x112   :  { %1376 = vmatpush3.msra.mxu0 %v648_v30  ;;  %1386 = vmatprep.subr.mxu1 %v942_v38 }
 0x113   :  { %1377 = vmatprep.subr.mxu0 %v647_v31  ;;  %1387 = vmatpush3.msra.mxu1 %v942_v38 }
 0x114   :  { %1378 = vmatpush3.msra.mxu0 %v647_v31  ;;  %1388 = vmatprep.subr.mxu1 %v941_v39 }
 0x115   :  { %1380 = vmatmul.mubr.msk.f32.vlgmr.msra.gmra.mxu0 %vm661_vm11, %v646_v14  ;;  %1393 = vmatprep.subr.mxu0 %v934_v32 }
 0x116   :  { %1394 = vmatpush3.msra.mxu0 %v934_v32  ;;  %1389 = vmatpush3.msra.mxu1 %v941_v39 }
 0x117   :  { %1395 = vmatprep.subr.mxu0 %v933_v33  ;;  %1404 = vmatprep.subr.mxu1 %v1119_v61 }
 0x118   :  { %1396 = vmatpush3.msra.mxu0 %v933_v33 }
 0x119   :  { %1397 = vmatprep.subr.mxu0 %v932_v35 }
 0x11a   :  { %1398 = vmatpush3.msra.mxu0 %v932_v35 }
 0x11b   :  { %1399 = vmatprep.subr.mxu0 %v931_v37 }
 0x11c   :  { %1400 = vmatpush3.msra.mxu0 %v931_v37 }
 0x1cd   :  { %v1359_v40 = vpop.f32.mrf.mxu0  ;;  %v1370_v42 = vpop.f32.mrf.mxu1 }
 0x1cf   :  { %v734_v41 = vpop.f32.mrf.mxu0  ;;  %v830_v49 = vpop.f32.mrf.mxu1 }
 0x1d5   :  { %v1381_v43 = vpop.f32.mrf.mxu0 }
 0x1d6   :  { %v917_v44 = vadd.f32 %v1381_v43, %v1359_v40 }
 0x1d7   :  { %v911_v46 = vpop.f32.mrf.mxu0 }
 0x1d8   :  { %v921_v47 = vadd.f32 %v1370_v42, %v917_v44  ;;  %v912_v48 = vadd.f32 %v911_v46, %v734_v41 }
 0x1da   :  { %v928_v50 = vadd.f32 %v1247_v45, %v921_v47  ;;  %v920_v51 = vadd.f32 %v912_v48, %v830_v49 }
 0x1dc   :  { %v930_v52 = vmax.f32 %v928_v50, 0.0  ;;  %v927_v53 = vadd.f32 %v1247_v45, %v920_v51 }
 0x1de   :  { %v929_v54 = vmax.f32 %v927_v53, 0.0  ;;  %v936_v55 = vrot.slane %v930_v52, 4 }
 0x1e0   :  { %v935_v56 = vrot.slane %v929_v54, 4  ;;  %1401 = vmatprep.mubr.msk.f32.mxu0 %vm661_vm11, %v929_v54 }
 0x1e1   :  { %1402 = vmatmul.mubr.msk.f32.vlgmr.msra.gmra.mxu0 %vm661_vm11, %v930_v52 }
 0x1e2   :  { %v938_v57 = vsel %vm745_vm9, %v936_v55, %v935_v56  ;;  %v937_v58 = vsel %vm745_vm9, %v935_v56, %v936_v55 }
 0x1e3   :  { %v939_v59 = vsel %vm97_vm8, %v938_v57, 0.0  ;;  %v940_v60 = vsel %vm98_vm10, %v937_v58, 0.0 }
 0x1e4   :  { %1390 = vmatprep.mubr.msk.f32.mxu1 %vm661_vm11, %v939_v59 }
 0x1e5   :  { %1391 = vmatmul.mubr.msk.f32.vlgmr.msra.gmra.mxu1 %vm661_vm11, %v940_v60 }
 0x1e6   :  { %1405 = vmatpush3.msra.mxu1 %v1119_v61 }
 0x1e7   :  { %1406 = vmatprep.subr.mxu1 %v1118_v62 }
 0x1e8   :  { %1407 = vmatpush3.msra.mxu1 %v1118_v62 }
 0x1e9   :  { %1408 = vmatprep.subr.mxu1 %v1117_v63 }
 0x1ea   :  { %1409 = vmatpush3.msra.mxu1 %v1117_v63 }
 0x1eb   :  { %1410 = vmatprep.subr.mxu1 %v1116_v1 }
 0x1ec   :  { %1411 = vmatpush3.msra.mxu1 %v1116_v1 }
 0x2a1   :  { %v1403_v2 = vpop.f32.mrf.mxu0 }
 0x2a3   :  { %v1098_v5 = vpop.f32.mrf.mxu0 }
 0x2a5   :  { %v1392_v0 = vpop.f32.mrf.mxu1 }
 0x2a6   :  { %v1104_v4 = vadd.f32 %v1403_v2, %v1392_v0 }
 0x2a7   :  { %v1017_v6 = vpop.f32.mrf.mxu1 }
 0x2a8   :  { %v1099_v7 = vadd.f32 %v1098_v5, %v1017_v6  ;;  %v1113_v8 = vadd.f32 %v1252_v3, %v1104_v4 }
 0x2aa   :  { %v1112_v9 = vadd.f32 %v1252_v3, %v1099_v7  ;;  %v1115_v11 = vmax.f32 %v1113_v8, 0.0 }
 0x2ac   :  { %v1114_v10 = vmax.f32 %v1112_v9, 0.0 }
 0x2ae   :  { %1412 = vmatprep.mubr.msk.f32.mxu1 %vm661_vm11, %v1114_v10 }
 0x2af   :  { %1413 = vmatmul.mubr.msk.f32.vlgmr.msra.gmra.mxu1 %vm661_vm11, %v1115_v11 }
 0x36f   :  { %v1414_v13 = vpop.f32.mrf.mxu1 }
 0x370   :  { %v1203_v14 = vadd.f32 %v1414_v13, %v1253_v12 }
 0x371   :  { %v1197_v15 = vpop.f32.mrf.mxu1 }
 0x372   :  { %1207 = vst [vmem:[#allocation8 + $0x8] sm:$0xff] %v1203_v14  ;;  %v1198_v16 = vadd.f32 %v1253_v12, %v1197_v15 }
 0x374   :  { %1206 = vst [vmem:[#allocation8] sm:$0xff] %v1198_v16 }
 0x375   :  { %1492 = shalt.err (!%p1489_p5)
}
 0x376   :  { %1219 = dma.vmem_to_hbm [thread:$0]  %s1214_s2, 256, %s1659_s3, [#allocation4], %s1509_s20, %s1509_s20, %s1510_s21  }
 0x377   :  { %1505 = dma.done.wait [#allocation4], 256  }
 0x378   :  { %1506 = vsyncadd [#allocation4], 4294967040 }
 0x379   :  { %1223 = vsyncpa [#allocation3], 1 }
 0x37a   :  { %1224 = vsyncpa [#allocation6], 1 }
 0x37b   :  { %1225 = vsyncpa [#allocation4], 1 }

</bundles_post_ra>
